<compile_context>
chip_gen: v7x
topology: tpu7x:2x2x1
jax: 0.10.0
libtpu: 0.0.40
codegen_flags: <defaults>
</compile_context>

<pallas_src>
import jax
import jax.numpy as jnp
from jax.experimental import pallas as pl
from jax.experimental.pallas import tpu as pltpu


_VMEM_LIMIT_BYTES = 48 * 1024 * 1024   # explicit scoped-VMEM limit (all gens)
_VMEM_BUDGET_BYTES = 40 * 1024 * 1024  # what the tiling plans against


def _round_up(x, m):
    return (x + m - 1) // m * m


def combine_kernel(x_ref, w_ref, b_ref, o_ref):
    # x streams in as f32; cast on the VPU so the MXU runs full-rate bf16.
    x_bf16 = x_ref[...].astype(jnp.bfloat16)
    # (TM, 2H) bf16 @ (2H, H) bf16 -> f32 accumulate on the MXU.
    acc = jnp.dot(x_bf16, w_ref[...], preferred_element_type=jnp.float32)
    # f32 bias add (bias block is VMEM-resident), cast to output dtype.
    o_ref[...] = (acc + b_ref[...]).astype(o_ref.dtype)


def prepare_combine_params(W, b):
    """One-time parameter prep (call at init, NOT per forward).

    W: (H, 2H) float32 (PyTorch nn.Linear weight layout)
    b: (H,)    float32
    Returns (w_p, b_p): (2H, H) bf16 MXU operand and (1, H) f32 bias.
    """
    w_p = jnp.asarray(W).T.astype(jnp.bfloat16)               # (2H, H)
    b_p = jnp.asarray(b).astype(jnp.float32).reshape(1, -1)   # (1, H)
    return w_p, b_p


def combine_forward(x, w_p, b_p, *, tm=512):
    """y = x @ W.T + b using prepared params (see prepare_combine_params).

    x:   (N, 2H) float32
    w_p: (2H, H) bfloat16
    b_p: (1, H)  float32
    returns (N, H) in x.dtype
    """
    N, in_dim = x.shape
    in_dim_w, H = w_p.shape
    assert in_dim == in_dim_w, "weight / input feature-dim mismatch"
    assert b_p.shape == (1, H), "bias must be prepared as (1, H)"

    out_dtype = x.dtype
    x_itemsize = jnp.dtype(x.dtype).itemsize
    out_itemsize = jnp.dtype(out_dtype).itemsize

    # ---- row-tile derivation (VMEM-budget aware) --------------------------
    # Resident blocks (constant index_map -> single VMEM copy, no re-DMA):
    resident_bytes = w_p.size * 2 + b_p.size * 4
    # Streaming blocks (double-buffered by the pipeline): x tile + out tile.
    stream_bytes_per_row = 2 * (in_dim * x_itemsize + H * out_itemsize)

    # NOTE: for very large H the resident-weight design stops fitting VMEM;
    # the right fix is a K grid axis ("arbitrary") with an f32 accumulator,
    # not shrinking TM. Guard explicitly rather than silently OOM-ing.
    assert resident_bytes + 8 * stream_bytes_per_row <= _VMEM_BUDGET_BYTES, (
        "resident weight exceeds the VMEM budget; use a K-tiled variant")

    TM = min(tm, _round_up(N, 8))
    tm_budget = (_VMEM_BUDGET_BYTES - resident_bytes) // stream_bytes_per_row
    TM = min(TM, max(8, (tm_budget // 8) * 8))
    # v7x megacore: ensure moderate/large batches give the "parallel" row grid
    # at least 2 steps so both TensorCores get work (no-op on v5e/v6e).
    if pl.cdiv(N, TM) < 2 and N >= 256:
        TM = max(128, _round_up(pl.cdiv(N, 2), 8))

    grid = (pl.cdiv(N, TM),)

    cost = pl.CostEstimate(
        flops=2 * N * in_dim * H,
        transcendentals=0,
        bytes_accessed=(x.size * x_itemsize + w_p.size * 2 + b_p.size * 4
                        + N * H * out_itemsize),
    )

    return pl.pallas_call(
        combine_kernel,
        out_shape=jax.ShapeDtypeStruct((N, H), out_dtype),
        grid=grid,
        in_specs=[
            # x: streaming (TM, 2H) f32 tile; full feature dim, no padding.
            pl.BlockSpec((TM, in_dim), lambda i: (i, 0),
                         memory_space=pltpu.MemorySpace.VMEM),
            # weight: single full (2H, H) bf16 block, VMEM-resident across
            # all grid steps (constant index_map -> no re-DMA).
            pl.BlockSpec((in_dim, H), lambda i: (0, 0),
                         memory_space=pltpu.MemorySpace.VMEM),
            # bias: single (1, H) f32 block, VMEM-resident.
            pl.BlockSpec((1, H), lambda i: (0, 0),
                         memory_space=pltpu.MemorySpace.VMEM),
        ],
        # out: streaming (TM, H) tile, full H (masked stores on sub-128 H are
        # cheaper than 4x-padded f32 HBM writeback for a mem-bound op).
        out_specs=pl.BlockSpec((TM, H), lambda i: (i, 0),
                               memory_space=pltpu.MemorySpace.VMEM),
        compiler_params=pltpu.CompilerParams(
            dimension_semantics=("parallel",),
            vmem_limit_bytes=_VMEM_LIMIT_BYTES,
        ),
        cost_estimate=cost,
    )(x, w_p, b_p)


if __name__ == "__main__":
    hidden_size = 32
    in_dim = 2 * hidden_size  # sent_in_dim
    batch = 8

    key = jax.random.PRNGKey(0)
    kx, kw, kb = jax.random.split(key, 3)

    # Deterministic synthetic parameters (PyTorch nn.Linear layout: W (H, 2H), b (H,))
    W = jax.random.normal(kw, (hidden_size, in_dim), dtype=jnp.float32) * 0.1
    b = jax.random.normal(kb, (hidden_size,), dtype=jnp.float32) * 0.1
    x = jax.random.normal(kx, (batch, in_dim), dtype=jnp.float32)

    # Parameter prep happens exactly once, outside the per-call path.
    w_p, b_p = prepare_combine_params(W, b)
    w_p, b_p = jax.block_until_ready((w_p, b_p))

    out = combine_forward(x, w_p, b_p)
    out = jax.block_until_ready(out)

    # Reference check against plain JAX (== PyTorch Linear semantics).
    # Operands go through the MXU in bf16 (f32 accumulation), so use a
    # correspondingly loosened tolerance.
    ref = x @ W.T + b
    assert out.shape == (batch, hidden_size)
    assert out.dtype == x.dtype
    assert jnp.allclose(out, ref, atol=2e-2, rtol=2e-2), (
        float(jnp.max(jnp.abs(out - ref)))
    )

    print("KERNEL_OK")
</pallas_src>

<mosaic_0001>
module attributes {stable_mosaic.version = 11 : i64} {
  func.func @combine_kernel(%arg0: i32, %arg1: memref<8x64xf32, #tpu.memory_space<vmem>>, %arg2: memref<64x32xbf16, #tpu.memory_space<vmem>>, %arg3: memref<1x32xf32, #tpu.memory_space<vmem>>, %arg4: memref<8x32xf32, #tpu.memory_space<vmem>>) attributes {dimension_semantics = [#tpu.dimension_semantics<parallel>], iteration_bounds = array<i64: 1>, scalar_prefetch = 0 : i64, scratch_operands = 0 : i64, tpu.core_type = #tpu.core_type<tc>, window_params = [{transform_indices = @transform_0, window_bounds = array<i64: 8, 64>}, {pipeline_mode = #tpu.pipeline_mode<synchronous>, transform_indices = @transform_1, window_bounds = array<i64: 64, 32>}, {pipeline_mode = #tpu.pipeline_mode<synchronous>, transform_indices = @transform_2, window_bounds = array<i64: 1, 32>}, {transform_indices = @transform_3, window_bounds = array<i64: 8, 32>}]} {
    %c0 = arith.constant 0 : index
    %c0_0 = arith.constant 0 : index
    %0 = vector.load %arg1[%c0, %c0_0] : memref<8x64xf32, #tpu.memory_space<vmem>>, vector<8x64xf32>
    %1 = arith.truncf %0 : vector<8x64xf32> to vector<8x64xbf16>
    %c0_1 = arith.constant 0 : index
    %c0_2 = arith.constant 0 : index
    %2 = vector.load %arg2[%c0_1, %c0_2] : memref<64x32xbf16, #tpu.memory_space<vmem>>, vector<64x32xbf16>
    %cst = arith.constant dense<0.000000e+00> : vector<8x32xf32>
    %3 = tpu.matmul %1, %2, %cst {dimension_numbers = #tpu.dot_dimension_numbers<[1], [0], [0], [1], [0, 0, 1, 1], [], []>} : vector<8x64xbf16>, vector<64x32xbf16>, vector<8x32xf32> -> vector<8x32xf32>
    %c0_3 = arith.constant 0 : index
    %c0_4 = arith.constant 0 : index
    %4 = vector.load %arg3[%c0_3, %c0_4] : memref<1x32xf32, #tpu.memory_space<vmem>>, vector<1x32xf32>
    %5 = vector.broadcast %4 : vector<1x32xf32> to vector<8x32xf32>
    %6 = arith.addf %3, %5 : vector<8x32xf32>
    %c0_5 = arith.constant 0 : index
    %c0_6 = arith.constant 0 : index
    %7 = vector.load %arg4[%c0_5, %c0_6] : memref<8x32xf32, #tpu.memory_space<vmem>>, vector<8x32xf32>
    tpu.vector_store %arg4[%c0_5, %c0_6], %6 {strides = array<i32>} : memref<8x32xf32, #tpu.memory_space<vmem>>, vector<8x32xf32>,
    return
  }
  func.func @transform_0(%arg0: i32) -> (i32, i32) {
    %c0_i32 = arith.constant 0 : i32
    %c0_i32_0 = arith.constant 0 : i32
    return %arg0, %c0_i32 : i32, i32
  }
  func.func @transform_1(%arg0: i32) -> (i32, i32) {
    %c0_i32 = arith.constant 0 : i32
    %c0_i32_0 = arith.constant 0 : i32
    %c0_i32_1 = arith.constant 0 : i32
    return %c0_i32, %c0_i32_0 : i32, i32
  }
  func.func @transform_2(%arg0: i32) -> (i32, i32) {
    %c0_i32 = arith.constant 0 : i32
    %c0_i32_0 = arith.constant 0 : i32
    %c0_i32_1 = arith.constant 0 : i32
    return %c0_i32, %c0_i32_0 : i32, i32
  }
  func.func @transform_3(%arg0: i32) -> (i32, i32) {
    %c0_i32 = arith.constant 0 : i32
    %c0_i32_0 = arith.constant 0 : i32
    return %arg0, %c0_i32 : i32, i32
  }
}

</mosaic_0001>

<bundles_post_ra>
// kernel: tpu_custom_call.1
= control target key start
LH: loop header
LB: loop body
LE: loop exit
PB: predicated region body
PF: predicated region fallthrough
CT: control target
= control target key end

     0   :  { %v171_v1 = vmov 0.0   ;;  %vm172_vm0 = vmmov 0   ;;  %s224_s0 = inlined_call_operand.vmem [shape: f32[8,64], index: 0, kind: input, shape index: {}]   ;;  %s225_s1 = inlined_call_operand.vmem [shape: bf16[64,32], index: 1, kind: input, shape index: {}]   ;;  %s226_s2 = inlined_call_operand.vmem [shape: f32[1,32], index: 2, kind: input, shape index: {}]   ;;  %s227_s3 = inlined_call_operand.hbm [shape: f32[8,32], index: 3, kind: output, shape index: {}]  }
   0x1   :  { %v143_v0 = vld [vmem:[%s225_s1] sm:$0xff]   ;;  %128 = vmatprep.subr.bf16.mxu0 %v171_v1  ;;  %v144_v2 = vld [vmem:[%s225_s1 + $0x8] sm:$0xff]   ;;  %136 = vmatprep.mubr.msk.bf16.mxu0 %vm172_vm0, %v171_v1 }
   0x2   :  { %129 = vmatpush3.bf16.msra.mxu0 %v143_v0 }
   0x3   :  { %130 = vmatprep.subr.bf16.mxu0 %v171_v1 }
   0x4   :  { %8 = vsyncpa [#allocation3], 0  ;;  %v145_v3 = vld [vmem:[%s225_s1 + $0x10] sm:$0xff]   ;;  %v146_v4 = vld [vmem:[%s225_s1 + $0x18] sm:$0xff]   ;;  %vm57_vm1 = vcmask 523264   ;;  %s173_s24 = smov [#allocation2]  }
   0x5   :  { %v16_v5 = vld [vmem:[%s224_s0] sm:$0xff]  ;;  %s109_s25 = sshll.u32 %s173_s24, 4  ;;  %vm101_vm2 = vcmask 261120   ;;  %s110_s25 = int_to_ptr.vmem [resolvable:$true] %s109_s25 }
   0x6   :  { %131 = vmatpush3.bf16.msra.mxu0 %v144_v2  ;;  %v17_v6 = vpack.c.bf16 %v16_v5, %v16_v5  ;;  %v117_v7 = vld [vmem:[%s226_s2] ss:$0 sm:$0xff]  ;;  %s147_s0 = scalar_lea.vmem %s110_s25, 128  ;;  %p152_p1 = scmp.lt.s32.totalorder %s110_s25, %s110_s25 }
   0x7   :  { %132 = vmatprep.subr.bf16.mxu0 %v171_v1  ;;  %p148_p0 = scmp.ne.s32.totalorder %s110_s25, %s147_s0  ;;  %p153_p2 = scmp.lt.s32.totalorder %s147_s0, %s147_s0 }
   0x9   :  { %p154_p3 = por %p153_p2, %p152_p1 }
   0xa   :  { %133 = vmatpush3.bf16.msra.mxu0 %v145_v3 }
   0xb   :  { %134 = vmatprep.subr.bf16.mxu0 %v171_v1  ;;  %p155_p4 = pnand %p154_p3, %p148_p0 }
   0xe   :  { %135 = vmatpush3.bf16.msra.mxu0 %v146_v4 }
  0x11   :  { %137 = vmatmul.mubr.msk.bf16.vlgmr.msra.gmra.mrb[0].mxu0 %vm57_vm1, %v17_v6 }
  0xe4   :  { %v95_v8 = vpop.f32.mrb[0].mxu0 }
  0xe5   :  { %v96_v9 = vadd.f32 %v117_v7, %v95_v8  ;;  %v138_v10 = vpop.f32.mrb[1].mxu0 }
  0xe6   :  { %v98_v11 = vpop.f32.mrb[2].mxu0 }
  0xe7   :  { %v139_v12 = vpop.f32.mrb[3].mxu0  ;;  %102 = vst.msk [vmem:[#allocation2] sm:$0xff] %vm101_vm2, %v96_v9 }
  0xe8   :  { %158 = shalt.err (!%p155_p4)
}
  0xe9   :  { %s159_s2 = scalar_lea.hbm %s227_s3, 128 }
  0xea   :  { %p160_p5 = scmp.ne.s32.totalorder %s227_s3, %s159_s2  ;;  %p163_p6 = scmp.lt.u32.totalorder %s159_s2, %s227_s3 }
  0xec   :  { %p165_p7 = pnand %p163_p6, %p160_p5 }
  0xee   :  { %168 = shalt.err (!%p165_p7)
}
  0xef   :  { %112 = dma.vmem_to_hbm [thread:$0]  %s110_s25, 128, %s227_s3, [#allocation3]  }
  0xf0   :  { %169 = dma.done.wait [#allocation3], 128  }
  0xf1   :  { %170 = vsyncadd [#allocation3], 4294967168 }
  0xf2   :  { %116 = vsyncpa [#allocation3], 1 }

</bundles_post_ra>
